<compile_context>
chip_gen: v6e
topology: v6e:2x2x1
jax: 0.10.0
libtpu: 0.0.40
codegen_flags: <defaults>
</compile_context>

<pallas_src>
import jax
import jax.numpy as jnp
from jax import lax
from jax.experimental import pallas as pl
from jax.experimental.pallas import tpu as pltpu


def _unpool_kernel(x_ref, e_ref, w_ref, o_ref):
    # x_ref: (Ct, Ht, W)        input tile
    # e_ref: (W, S*S*W)         one-hot lane-spread matrix (resident constant)
    # w_ref: (Ct, 1, S*S*W)     taps laid out along the packed output lane axis
    # o_ref: (Ct, Ht, S*S*W)    packed output: lane a*W*S + w*S + b of row h is
    #                           output pixel (h*S + a, w*S + b)
    Ct, Ht, W = x_ref.shape
    SWot = o_ref.shape[-1]

    prec = (lax.Precision.HIGHEST if x_ref.dtype == jnp.float32
            else lax.Precision.DEFAULT)

    x2 = x_ref[...].reshape(Ct * Ht, W)                   # batch channels into M
    xs = jnp.dot(x2, e_ref[...], precision=prec,
                 preferred_element_type=jnp.float32)      # (Ct*Ht, SWot) lane spread
    xs = xs.reshape(Ct, Ht, SWot)
    # One multiply per output element (taps), then a single dense whole-tile store.
    o_ref[...] = (xs * w_ref[...]).astype(o_ref.dtype)


def _vmem_capacity_bytes():
    """Physical VMEM of the current chip (conservative 64 MiB fallback)."""
    try:
        cap = int(getattr(pltpu.get_tpu_info(), "vmem_capacity_bytes", 0))
        if cap > 0:
            return cap
    except Exception:
        pass
    return 64 * 1024 * 1024  # v7x-sized fallback is safe on every generation


def _pick_tiles(C, H, W, S, in_isz, out_isz, budget_bytes):
    """Pick (Ct, Ht) so the per-step working set (incl. double-buffers and
    f32 temporaries) fits the VMEM budget.  Returns (Ct, Ht, estimate_bytes)."""
    swot = S * S * W

    def step_bytes(ct, ht):
        in_b = ct * ht * W * in_isz            # input block
        out_b = ct * ht * swot * out_isz       # output block
        tmp_b = 2 * ct * ht * swot * 4         # xs (f32) + product before cast
        const_b = W * swot * in_isz + ct * swot * 4   # E + wl
        return 2 * (in_b + out_b) + tmp_b + 2 * const_b   # 2x = double-buffering

    # Row tile must divide H and be full H or a multiple of 8 ((8,128) rule).
    ht_cands = [d for d in range(1, H + 1) if H % d == 0 and (d == H or d % 8 == 0)]
    ct_cands = [d for d in range(1, C + 1) if C % d == 0]

    feasible = [(ct, ht) for ht in ht_cands for ct in ct_cands
                if step_bytes(ct, ht) <= budget_bytes]
    if feasible:
        # Prefer an even channel-grid extent (balanced megacore split on v7x),
        # then the largest tile (amortize ~0.35us/step; kernel is HBM-bound).
        feasible.sort(key=lambda p: (((C // p[0]) % 2 == 0), p[0] * p[1], p[0]))
        ct, ht = feasible[-1]
    else:
        # Smallest legal tile; caller raises vmem_limit to match the estimate.
        ct, ht = 1, min(ht_cands)
    return ct, ht, step_bytes(ct, ht)


def unpool(x_nchw, weights, stride):
    """F.conv_transpose2d(x, weights, stride=stride, groups=C) for (C,1,S,S) taps."""
    N, C, H, W = x_nchw.shape
    S = int(stride)
    assert weights.shape == (C, 1, S, S), "expect depthwise (C,1,S,S) taps with S == stride"
    Wo = W * S
    SWot = S * Wo  # packed output lanes per input row
    in_dtype = x_nchw.dtype

    # Hoisted one-hot lane-spread matrix:  E[w, a*Wo + v] = 1 iff v // S == w.
    # (bf16/f32 one-hot is exact, so we keep it in the input dtype.)
    sel = (jnp.arange(Wo, dtype=jnp.int32)[None, :] // S
           == jnp.arange(W, dtype=jnp.int32)[:, None]).astype(in_dtype)   # (W, Wo)
    E = jnp.tile(sel, (1, S))                                             # (W, S*Wo)

    # Tap table along the packed output lane axis:
    #   wl[c, 0, a*Wo + w*S + b] = weights[c, 0, a, b]
    wt = weights.reshape(C, S, S).astype(jnp.float32)
    wl = jnp.tile(wt[:, :, None, :], (1, 1, W, 1)).reshape(C, 1, SWot)

    cap = _vmem_capacity_bytes()
    budget = min(24 << 20, cap // 4)          # ~24 MiB on 128 MiB parts, 16 MiB on v7x
    in_isz = x_nchw.dtype.itemsize
    Ct, Ht, est = _pick_tiles(C, H, W, S, in_isz, in_isz, budget)
    vmem_limit = int(min(cap * 7 // 8, max(est + (8 << 20), 32 << 20)))

    grid = (C // Ct, N, H // Ht)              # channel axis first for megacore split

    out_packed = pl.pallas_call(
        _unpool_kernel,
        out_shape=jax.ShapeDtypeStruct((N, C, H, SWot), in_dtype),
        grid=grid,
        in_specs=[
            pl.BlockSpec((None, Ct, Ht, W), lambda cb, n, hb: (n, cb, hb, 0)),
            pl.BlockSpec((W, SWot), lambda cb, n, hb: (0, 0)),        # resident const
            pl.BlockSpec((Ct, 1, SWot), lambda cb, n, hb: (cb, 0, 0)),
        ],
        out_specs=pl.BlockSpec((None, Ct, Ht, SWot),
                               lambda cb, n, hb: (n, cb, hb, 0)),
        compiler_params=pltpu.CompilerParams(
            dimension_semantics=("parallel", "parallel", "parallel"),
            vmem_limit_bytes=vmem_limit,
        ),
    )(x_nchw, E, wl)

    # Row-major, metadata-only reshape: (N, C, H, S*S*W) == (N, C, H*S, W*S),
    # since lane a*Wo + w*S + b of packed row h is output pixel (h*S+a, w*S+b).
    return out_packed.reshape(N, C, H * S, Wo)


if __name__ == "__main__":
    key = jax.random.PRNGKey(0)
    N, C, H, W = 2, 4, 16, 16
    stride = 2

    x = jax.random.normal(key, (N, C, H, W), dtype=jnp.float32)

    # Deterministic parameters exactly as in Unpool.__init__:
    #   weights = zeros(C, 1, S, S); weights[:, :, 0, 0] = 1
    weights = jnp.zeros((C, 1, stride, stride), dtype=jnp.float32)
    weights = weights.at[:, :, 0, 0].set(1.0)

    out = jax.block_until_ready(unpool(x, weights, stride))

    # Reference for the one-hot depthwise kernel: zero-fill upsample placing x
    # at the (0, 0) corner of each SxS cell.
    ref = jnp.zeros((N, C, H * stride, W * stride), dtype=x.dtype)
    ref = ref.at[:, :, ::stride, ::stride].set(x)

    assert out.shape == ref.shape
    assert out.dtype == x.dtype
    assert jnp.allclose(out, ref)

    # General (arbitrary-tap) path: with stride == kernel_size each output
    # pixel gets exactly one tap, so out[n,c,r,v] = x[n,c,r//S,v//S]*w[c,r%S,v%S].
    w_rand = jax.random.normal(jax.random.PRNGKey(1), (C, 1, stride, stride),
                               dtype=jnp.float32)
    out_general = jax.block_until_ready(unpool(x, w_rand, stride))
    x_up = jnp.repeat(jnp.repeat(x, stride, axis=2), stride, axis=3)
    w_up = jnp.tile(w_rand[:, 0], (1, H, W))[None]
    assert jnp.allclose(out_general, x_up * w_up)

    print("KERNEL_OK")
</pallas_src>

<mosaic_0001>
module attributes {stable_mosaic.version = 11 : i64} {
  func.func @_unpool_kernel(%arg0: i32, %arg1: i32, %arg2: i32, %arg3: memref<1x2x16x16xf32, #tpu.memory_space<vmem>>, %arg4: memref<16x64xf32, #tpu.memory_space<vmem>>, %arg5: memref<2x1x64xf32, #tpu.memory_space<vmem>>, %arg6: memref<1x2x16x64xf32, #tpu.memory_space<vmem>>) attributes {dimension_semantics = [#tpu.dimension_semantics<parallel>, #tpu.dimension_semantics<parallel>, #tpu.dimension_semantics<parallel>], iteration_bounds = array<i64: 2, 2, 1>, scalar_prefetch = 0 : i64, scratch_operands = 0 : i64, tpu.core_type = #tpu.core_type<tc>, window_params = [{transform_indices = @transform_0, window_bounds = array<i64: 1, 2, 16, 16>}, {pipeline_mode = #tpu.pipeline_mode<synchronous>, transform_indices = @transform_1, window_bounds = array<i64: 16, 64>}, {transform_indices = @transform_2, window_bounds = array<i64: 2, 1, 64>}, {transform_indices = @transform_3, window_bounds = array<i64: 1, 2, 16, 64>}]} {
    %c0 = arith.constant 0 : index
    %c0_0 = arith.constant 0 : index
    %c0_1 = arith.constant 0 : index
    %c0_2 = arith.constant 0 : index
    %0 = vector.load %arg3[%c0, %c0_0, %c0_1, %c0_2] : memref<1x2x16x16xf32, #tpu.memory_space<vmem>>, vector<1x2x16x16xf32>
    %1 = vector.shape_cast %0 : vector<1x2x16x16xf32> to vector<2x16x16xf32>
    %2 = vector.shape_cast %1 : vector<2x16x16xf32> to vector<32x16xf32>
    %c0_3 = arith.constant 0 : index
    %c0_4 = arith.constant 0 : index
    %3 = vector.load %arg4[%c0_3, %c0_4] : memref<16x64xf32, #tpu.memory_space<vmem>>, vector<16x64xf32>
    %cst = arith.constant dense<0.000000e+00> : vector<32x64xf32>
    %4 = tpu.matmul %2, %3, %cst {dimension_numbers = #tpu.dot_dimension_numbers<[1], [0], [0], [1], [0, 0, 1, 1], [], []>, precision = #tpu.contract_precision<fp32>} : vector<32x16xf32>, vector<16x64xf32>, vector<32x64xf32> -> vector<32x64xf32>
    %5 = vector.shape_cast %4 : vector<32x64xf32> to vector<2x16x64xf32>
    %c0_5 = arith.constant 0 : index
    %c0_6 = arith.constant 0 : index
    %c0_7 = arith.constant 0 : index
    %6 = vector.load %arg5[%c0_5, %c0_6, %c0_7] : memref<2x1x64xf32, #tpu.memory_space<vmem>>, vector<2x1x64xf32>
    %7 = vector.broadcast %6 : vector<2x1x64xf32> to vector<2x16x64xf32>
    %8 = arith.mulf %5, %7 : vector<2x16x64xf32>
    %c0_8 = arith.constant 0 : index
    %c0_9 = arith.constant 0 : index
    %c0_10 = arith.constant 0 : index
    %c0_11 = arith.constant 0 : index
    %9 = vector.load %arg6[%c0_8, %c0_9, %c0_10, %c0_11] : memref<1x2x16x64xf32, #tpu.memory_space<vmem>>, vector<1x2x16x64xf32>
    %10 = vector.shape_cast %9 : vector<1x2x16x64xf32> to vector<2x16x64xf32>
    %11 = vector.shape_cast %8 : vector<2x16x64xf32> to vector<1x2x16x64xf32>
    tpu.vector_store %arg6[%c0_8, %c0_9, %c0_10, %c0_11], %11 {strides = array<i32>} : memref<1x2x16x64xf32, #tpu.memory_space<vmem>>, vector<1x2x16x64xf32>,
    return
  }
  func.func @transform_0(%arg0: i32, %arg1: i32, %arg2: i32) -> (i32, i32, i32, i32) {
    %c0_i32 = arith.constant 0 : i32
    %c0_i32_0 = arith.constant 0 : i32
    return %arg1, %arg0, %arg2, %c0_i32 : i32, i32, i32, i32
  }
  func.func @transform_1(%arg0: i32, %arg1: i32, %arg2: i32) -> (i32, i32) {
    %c0_i32 = arith.constant 0 : i32
    %c0_i32_0 = arith.constant 0 : i32
    %c0_i32_1 = arith.constant 0 : i32
    return %c0_i32, %c0_i32_0 : i32, i32
  }
  func.func @transform_2(%arg0: i32, %arg1: i32, %arg2: i32) -> (i32, i32, i32) {
    %c0_i32 = arith.constant 0 : i32
    %c0_i32_0 = arith.constant 0 : i32
    %c0_i32_1 = arith.constant 0 : i32
    return %arg0, %c0_i32, %c0_i32_0 : i32, i32, i32
  }
  func.func @transform_3(%arg0: i32, %arg1: i32, %arg2: i32) -> (i32, i32, i32, i32) {
    %c0_i32 = arith.constant 0 : i32
    %c0_i32_0 = arith.constant 0 : i32
    return %arg1, %arg0, %arg2, %c0_i32 : i32, i32, i32, i32
  }
}

</mosaic_0001>

<bundles_post_ra>
// kernel: tpu_custom_call.1
= control target key start
LH: loop header
LB: loop body
LE: loop exit
PB: predicated region body
PF: predicated region fallthrough
CT: control target
= control target key end

     0   :  { %s1894_s0 = inlined_call_operand.hbm [shape: f32[2,4,16,16], index: 0, kind: input, shape index: {}]   ;;  %s1895_s1 = inlined_call_operand.hbm [shape: f32[16,64], index: 1, kind: input, shape index: {}]   ;;  %s1896_s2 = inlined_call_operand.hbm [shape: f32[4,1,64], index: 2, kind: input, shape index: {}]   ;;  %s1897_s3 = inlined_call_operand.hbm [shape: f32[2,4,16,64], index: 3, kind: output, shape index: {}]  }
   0x1   :  { %1909 = sst [smem:[#allocation20_spill]] %s1894_s0 }
   0x2   :  { %1910 = sst [smem:[#allocation21_spill]] %s1897_s3 }
   0x3   :  { %8 = vsyncpa [#allocation3], 0 }
   0x4   :  { %10 = vsyncpa [#allocation3 + $0x1], 0 }
   0x5   :  { %11 = vsyncpa [#allocation6], 0 }
   0x6   :  { %12 = vsyncpa [#allocation4], 0 }
   0x7   :  { %14 = vsyncpa [#allocation4 + $0x1], 0  ;;  %s1546_s12 = smov 0   ;;  %s1548_s13 = smov 0  }
   0x8   :  { %s1550_s14 = smov 0   ;;  %s1552_s15 = smov 0  }
   0x9   :  { %s1554_s16 = smov 0   ;;  %s1556_s17 = smov 0  }
   0xa   :  { %s1558_s18 = smov 0   ;;  %s1560_s19 = smov 0  }
   0xb   :  { %s1562_s20 = smov 0   ;;  %s1564_s21 = smov 0  }
   0xc   :  { %s1566_s22 = smov 0  }
   0xd LB: > { %1911 = sst [smem:[#allocation13_spill]] %s1494_s17  ;;  %s35_s23 = sadd.s32 1, %s1506_s20  ;;  %s1514_s22 = sphi %s1566_s22, %s20_s22   ;;  %s1510_s21 = sphi %s1564_s21, %s1951_s21   ;;  %s1506_s20 = sphi %s1562_s20, %s1943_s20   ;;  %s1502_s19 = sphi %s1560_s19, %s1950_s19   ;;  %s1498_s18 = sphi %s1558_s18, %s1942_s18   ;;  %s1494_s17 = sphi %s1556_s17, %s1941_s17   ;;  %s1490_s16 = sphi %s1554_s16, %s1949_s16   ;;  %s1486_s15 = sphi %s1552_s15, %s1948_s15   ;;  %s1482_s14 = sphi %s1550_s14, %s1947_s14   ;;  %s1478_s13 = sphi %s1548_s13, %s1946_s13   ;;  %s1474_s12 = sphi %s1546_s12, %s1945_s12  }
   0xe   : > { %1912 = sst [smem:[#allocation14_spill]] %s1498_s18  ;;  %s39_s24 = sadd.s32 1, %s1510_s21 }
   0xf   : > { %1913 = sst [smem:[#allocation15_spill]] %s1506_s20  ;;  %p37_p0 = scmp.ge.s32.totalorder %s35_s23, 2 }
  0x10   : > { %s50_s25 = sadd.s32 1, %s1494_s17  ;;  %p57_p1 = scmp.ne.s32.totalorder %s1494_s17, %s1490_s16 }
  0x11   : > { %p1902_p2 = scmp.eq.s32.totalorder %s1514_s22, 0  ;;  %s1953_s23 = smov (%p37_p0, %s35_s23), 0 }
  0x12   : > { %1914 = sst [smem:[#allocation16_spill]] %s1953_s23  ;;  %s1955_s24 = smov (!%p37_p0, %s39_s24), %s1510_s21 }
  0x13   : > { %s43_s26 = ssub.s32 %s1506_s20, %s1953_s23  ;;  %p1617_p3 = por %p1902_p2, %p57_p1 }
  0x14   : > { %p41_p4 = scmp.ge.s32.totalorder %s1955_s24, 2  ;;  %p1901_p5 = scmp.lt.s32.totalorder %s1514_s22, 4 }
  0x15   : > { %s177_s28 = sand.u32 1, %s1514_s22   ;;  %s179_s4 = sand.u32 1, %s1494_s17  }
  0x16   : > { %s1957_s24 = smov (%p41_p4, %s1955_s24), 0  ;;  %s1059_s5 = sshll.u32 %s179_s4, 5 }
  0x17   : > { %1916 = sst [smem:[#allocation17_spill]] %s1957_s24  ;;  %s1627_s29 = ssub.s32 %s1510_s21, %s1957_s24 }
  0x18   : > { %s45_s30 = sor.u32 %s1627_s29, %s43_s26  ;;  %p95_p6 = scmp.eq.s32.totalorder %s1627_s29, 0 }
  0x19   : > { %p48_p7 = scmp.eq.s32.totalorder %s45_s30, 0  ;;  %s1081_s6 = sshll.u32 %s1510_s21, 2 }
  0x1a   : > { %s1062_s8 = sshll.u32 %s1506_s20, 3  ;;  %s181_s10 = scalar_lea.vmem [#allocation2], %s1059_s5 }
  0x1b   : > { %s1634_s7 = scalar_select %p48_p7, %s1494_s17, %s50_s25  }
  0x1c   : > { %s190_s9 = sadd.s32 %s1081_s6, %s1062_s8  ;;  %s193_s11 = sshll.u32 %s181_s10, 4  ;;  %s194_s11 = int_to_ptr.vmem [resolvable:$true] %s193_s11 }
  0x1d   : > { %1917 = sst [smem:[#allocation18_spill]] %s1634_s7  ;;  %s1063_s23 = sshll.u32 %s190_s9, 7 }
  0x1e   : > { %s1918_s0 = sld [smem:[#allocation20_spill]]  ;;  %p1644_p8 = pnand %p1901_p5, %p1617_p3 }
  0x1f   : > { %s1648_s30 = scalar_lea.sflag [#allocation3], %s177_s28  ;;  %s1317_s25 = scalar_lea.vmem %s194_s11, 512 }
  0x20   : > { %p1306_p9 = pneg %p1644_p8  ;;  %p1318_p10 = scmp.ne.s32.totalorder %s194_s11, %s1317_s25 }
  0x21   : > { %s1516_s4 = smov [#allocation2]  }
  0x22   : > { %p1320_p11 = pnand %p1318_p10, %p1306_p9  ;;  %s1322_s5 = sshll.u32 %s1516_s4, 4  ;;  %s1323_s5 = int_to_ptr.vmem [resolvable:$false] %s1322_s5 }
  0x23   : > { %s1324_s3 = scalar_lea.vmem %s1323_s5, 1024  ;;  %p1325_p13 = scmp.lt.s32.totalorder %s194_s11, %s1323_s5 }
  0x24   : > { %s192_s24 = scalar_lea.hbm %s1918_s0, %s1063_s23  ;;  %p1321_p12 = pneg %p1320_p11 }
  0x25   : > { %p1326_p0 = scmp.lt.s32.totalorder %s1324_s3, %s1317_s25 }
  0x27   : > { %p1327_p4 = por %p1326_p0, %p1325_p13 }
  0x29   : > { %p1328_p3 = pnand %p1327_p4, %p1321_p12 }
  0x2b   : > { %1331 = shalt.err (!%p1328_p3)
}
  0x2c   : > { %s1517_s18 = smov 128   ;;  %s1518_s23 = smov 8  }
  0x2d   : > { %1197 = dma.hbm_to_vmem [thread:$0]  (!%p1644_p8), %s192_s24, 512, %s194_s11, %s1648_s30, %s1517_s18, %s1517_s18, %s1518_s23  }
  0x2e   : > { %s1659_s27 = sadd.s32 4294967295, %s1514_s22   ;;  %s1055_s28 = sadd.s32 4294967294, %s1514_s22  }
  0x2f   : > { %p63_p7 = scmp.ne.s32.totalorder %s1490_s16, %s1486_s15  ;;  %p1904_p9 = scmp.eq.s32.totalorder %s1659_s27, 0 }
  0x30   : > { %p110_p10 = scmp.ne.s32.totalorder %s1478_s13, %s1474_s12  ;;  %p138_p11 = scmp.eq.s32.totalorder %s1659_s27, 3 }
  0x31   : > { %p144_p12 = scmp.eq.s32.totalorder %s1055_s28, 3  ;;  %p1670_p8 = por %p1904_p9, %p63_p7 }
  0x32   : > { %p1676_p13 = por %p110_p10, %p1904_p9  ;;  %p1683_p0 = por %p138_p11, %p57_p1 }
  0x33   : > { %s1920_s24 = scalar_select %p1670_p8, 1, 0 }
  0x34   : > { %s1921_s6 = scalar_select %p1676_p13, 1, 0 }
  0x35   : > { %s1922_s12 = scalar_select %p1683_p0, 1, 0 }
  0x36   : > { %p1687_p4 = por %p144_p12, %p63_p7  ;;  %p1056_p3 = scmp.ge.s32.totalorder %s1514_s22, 1 }
  0x37   : > { %p151_p5 = scmp.lt.s32.totalorder %s1514_s22, 5  ;;  %s1519_s10 = smov [#allocation5]  }
  0x38   : > { %s1923_s8 = scalar_select %p1687_p4, 1, 0 }
  0x39   : > { %p1693_p2 = pnand %p1056_p3, %p151_p5  ;;  %s163_s11 = sshll.u32 %s1519_s10, 4  ;;  %s164_s11 = int_to_ptr.vmem [resolvable:$true] %s163_s11 }
  0x3a   : > { %s97_s26 = sadd.s32 1, %s1482_s14  ;;  %p104_p1 = scmp.ne.s32.totalorder %s1482_s14, %s1478_s13 }
  0x3b   : > { %p1190_p10 = pneg %p1693_p2  ;;  %s205_s4 = sand.u32 1, %s1482_s14  }
  0x3c   : > { %s1712_s5 = scalar_select %p95_p6, %s1482_s14, %s97_s26  }
  0x3d   : > { %p1704_p11 = pnand %p1190_p10, %p1904_p9  ;;  %p1927_p5 = scmp.eq.s32.totalorder %s1514_s22, 0 }
  0x3e   : > { %1926 = sst [smem:[#allocation19_spill]] %s1712_s5  ;;  %s1343_s28 = scalar_lea.vmem %s164_s11, 256 }
  0x3f   : > { %p1716_p7 = por %p104_p1, %p1927_p5  ;;  %p1334_p12 = pneg %p1704_p11 }
  0x40   : > { %p1344_p3 = scmp.ne.s32.totalorder %s164_s11, %s1343_s28  ;;  %p1351_p10 = scmp.lt.s32.totalorder %s164_s11, %s164_s11 }
  0x41   : > { %p1352_p9 = scmp.lt.s32.totalorder %s1343_s28, %s1343_s28 }
  0x42   : > { %p1346_p4 = pnand %p1344_p3, %p1334_p12 }
  0x43   : > { %p1353_p13 = por %p1352_p9, %p1351_p10 }
  0x44   : > { %p1347_p0 = pneg %p1346_p4 }
  0x46   : > { %p1354_p8 = pnand %p1353_p13, %p1347_p0 }
  0x48   : > { %1357 = shalt.err (!%p1354_p8)
}
  0x49   : > { %1193 = dma.hbm_to_vmem [thread:$0]  (!%p1704_p11), %s1895_s1, 256, %s164_s11, [#allocation6], %s1517_s18, %s1517_s18, %s1518_s23  }
  0x4a   : > { %s1064_s26 = sshll.u32 %s205_s4, 1  ;;  %s1082_s0 = sshll.u32 %s1510_s21, 5 }
  0x4b   : > { %s213_s28 = scalar_lea.hbm %s1896_s2, %s1082_s0  ;;  %s207_s17 = scalar_lea.vmem [#allocation7], %s1064_s26 }
  0x4c   : > { %s214_s5 = sshll.u32 %s207_s17, 4  ;;  %p1929_p6 = scmp.lt.s32.totalorder %s1514_s22, 4  ;;  %s215_s5 = int_to_ptr.vmem [resolvable:$true] %s214_s5 }
  0x4d   : > { %s1371_s29 = scalar_lea.vmem %s215_s5, 32  ;;  %s1520_s18 = smov [#allocation7]  }
  0x4e   : > { %p1738_p9 = pnand %p1929_p6, %p1716_p7  ;;  %p1372_p13 = scmp.ne.s32.totalorder %s215_s5, %s1371_s29 }
  0x4f   : > { %s1376_s23 = sshll.u32 %s1520_s18, 4  ;;  %s1377_s23 = int_to_ptr.vmem [resolvable:$false] %s1376_s23 }
  0x50   : > { %p1360_p8 = pneg %p1738_p9  ;;  %s1378_s0 = scalar_lea.vmem %s1377_s23, 64 }
  0x51   : > { %p1379_p1 = scmp.lt.s32.totalorder %s215_s5, %s1377_s23  ;;  %p1380_p11 = scmp.lt.s32.totalorder %s1378_s0, %s1371_s29 }
  0x52   : > { %p1374_p0 = pnand %p1372_p13, %p1360_p8 }
  0x53   : > { %p1381_p5 = por %p1380_p11, %p1379_p1 }
  0x54   : > { %p1375_p4 = pneg %p1374_p0 }
  0x56   : > { %p1382_p12 = pnand %p1381_p5, %p1375_p4 }
  0x58   : > { %1385 = shalt.err (!%p1382_p12)
}
  0x59   : > { %s1521_s17 = smov 16   ;;  %s1522_s20 = smov 1  }
  0x5a   : > { %1200 = dma.hbm_to_vmem [thread:$0]  (!%p1738_p9), %s213_s28, 32, %s215_s5, %s1648_s30, %s1521_s17, %s1521_s17, %s1522_s20  }
  0x5b   : > { %226 = sbr.rel (%p1693_p2) target bundleno = 353 (0x161), region = 32  ;;  %s228_s7 = sand.u32 (!%p1693_p2), 1, %s1659_s27  }
  0x5c   : > { %s230_s11 = sand.u32 (!%p1693_p2), 1, %s1490_s16   ;;  %s229_s3 = scalar_lea.sflag (!%p1693_p2), [#allocation3], %s228_s7 }
  0x5d   : > { %s1753_s4 = sshll.u32 (!%p1693_p2), %s230_s11, 5  ;;  %p1931_p7 = scmp.ne.s32.totalorder (!%p1693_p2), %s1920_s24, 0 }
  0x5e   : > { %s232_s10 = scalar_lea.vmem (!%p1693_p2), [#allocation2], %s1753_s4 }
  0x60   : > { %1457 = dma.done.wait (%p1931_p7), %s229_s3, 512  }
  0x61   : > { %1459 = vsyncadd (%p1931_p7), %s229_s3, 4294966784  ;;  %p1932_p3 = scmp.eq.s32.totalorder %s1659_s27, 0 }
  0x63   : > { %1461 = dma.done.wait (%p1932_p3), [#allocation6], 256   ;;  %p1933_p2 = pmov %p1932_p3 }
  0x64   : > { %s243_s30 = sand.u32 1, %s1478_s13   ;;  %p1934_p10 = scmp.ne.s32.totalorder %s1921_s6, 0 }
  0x65   : > { %1463 = vsyncadd (%p1933_p2), [#allocation6], 4294967040  ;;  %s1765_s9 = sshll.u32 %s243_s30, 1 }
  0x66   : > { %s245_s5 = scalar_lea.vmem [#allocation7], %s1765_s9 }
  0x67   : > { %1465 = dma.done.wait (%p1934_p10), %s229_s3, 32  }
  0x68   : > { %1467 = vsyncadd (%p1934_p10), %s229_s3, 4294967264  ;;  %vm284_vm0 = vcmask 130048   ;;  %v283_v0 = vld [vmem:[#allocation5 + $0x8] sm:$0xff]  ;;  %v282_v1 = vld [vmem:[#allocation5] sm:$0xff]  ;;  %s1935_s27 = sld [smem:[#allocation14_spill]]  ;;  %s1083_s24 = sshll.u32 %s1502_s19, 2 }
  0x69   : > { %v278_v2 = vld [vmem:[%s232_s10] sm:$0xff]  ;;  %v1772_v3 = vand.u32 4294901760, %v283_v0  ;;  %v1774_v4 = vand.u32 4294901760, %v282_v1  ;;  %v279_v6 = vld [vmem:[%s232_s10 + $0x8] sm:$0xff]  ;;  %v280_v7 = vld [vmem:[%s232_s10 + $0x10] sm:$0xff]  ;;  %vm903_vm1 = vcmask 523264  }
  0x6a   : > { %v286_v5 = vsel %vm284_vm0, %v278_v2, 0  ;;  %v281_v8 = vld [vmem:[%s232_s10 + $0x18] sm:$0xff]  ;;  %v289_v10 = vsel %vm284_vm0, %v279_v6, 0  ;;  %v292_v11 = vsel %vm284_vm0, %v280_v7, 0  ;;  %v1072_v6 = vld [vmem:[%s245_s5] ss:$0 sm:$0xff] }
  0x6b   : > { %v1776_v9 = vand.u32 4294901760, %v286_v5  ;;  %v295_v12 = vsel %vm284_vm0, %v281_v8, 0  ;;  %1120 = vmatprep.subr.mxu0 %v1772_v3  ;;  %v434_v13 = vsub.f32 %v283_v0, %v1772_v3  ;;  %v1780_v14 = vand.u32 4294901760, %v289_v10  ;;  %s272_s28 = scalar_lea.vmem [#allocation8], %s1753_s4  ;;  %s1936_s23 = sld [smem:[#allocation21_spill]] }
  0x6c   : > { %v441_v15 = vsub.f32 %v282_v1, %v1774_v4  ;;  %v1783_v16 = vand.u32 4294901760, %v292_v11  ;;  %1121 = vmatpush3.msra.mxu0 %v1772_v3  ;;  %v1788_v18 = vand.u32 4294901760, %v295_v12  ;;  %s927_s19 = sshll.u32 %s272_s28, 4  ;;  %s1834_s17 = scalar_lea.sflag [#allocation4], %s230_s11  ;;  %s1822_s19 = int_to_ptr.vmem [resolvable:$true] %s927_s19 }
  0x6d   : > { %v365_v17 = vsub.f32 %v286_v5, %v1776_v9  ;;  %1134 = vmatprep.mubr.f32.mxu1 %v1776_v9  ;;  %1122 = vmatprep.subr.mxu0 %v1774_v4  ;;  %v435_v19 = vand.u32 4294901760, %v434_v13  ;;  %v375_v20 = vsub.f32 %v289_v10, %v1780_v14  ;;  %s1386_s20 = scalar_lea.vmem %s1822_s19, 512  ;;  %p1937_p9 = scmp.ne.s32.totalorder %s1922_s12, 0 }
  0x6e   : > { %v442_v21 = vand.u32 4294901760, %v441_v15  ;;  %v385_v22 = vsub.f32 %v292_v11, %v1783_v16  ;;  %1123 = vmatpush3.msra.mxu0 %v1774_v4  ;;  %v395_v24 = vsub.f32 %v295_v12, %v1788_v18  ;;  %s1077_s6 = sshll.u32 %s1935_s27, 3  ;;  %p1387_p6 = scmp.ne.s32.totalorder %s1822_s19, %s1386_s20 }
  0x6f   : > { %v366_v23 = vand.u32 4294901760, %v365_v17  ;;  %v436_v25 = vsub.f32 %v434_v13, %v435_v19  ;;  %v376_v26 = vand.u32 4294901760, %v375_v20  ;;  %1140 = vmatprep.subr.mxu0 %v434_v13  ;;  %s924_s26 = sadd.s32 %s1083_s24, %s1077_s6  ;;  %s1523_s7 = smov [#allocation8]  }
  0x70   : > { %v443_v27 = vsub.f32 %v441_v15, %v442_v21  ;;  %v386_v28 = vand.u32 4294901760, %v385_v22  ;;  %v396_v30 = vand.u32 4294901760, %v395_v24  ;;  %s1078_s25 = sshll.u32 %s924_s26, 7  ;;  %p1388_p8 = pnand %p1387_p6, %p1937_p9 }
  0x71   : > { %v367_v29 = vsub.f32 %v365_v17, %v366_v23  ;;  %v437_v31 = vand.u32 4294901760, %v436_v25  ;;  %v377_v32 = vsub.f32 %v375_v20, %v376_v26  ;;  %s1828_s0 = scalar_lea.hbm %s1936_s23, %s1078_s25  ;;  %s1390_s4 = sshll.u32 %s1523_s7, 4  ;;  %s1391_s4 = int_to_ptr.vmem [resolvable:$false] %s1390_s4 }
  0x72   : > { %v444_v33 = vand.u32 4294901760, %v443_v27  ;;  %v387_v34 = vsub.f32 %v385_v22, %v386_v28  ;;  %v397_v36 = vsub.f32 %v395_v24, %v396_v30  ;;  %p1389_p13 = pneg %p1388_p8  ;;  %s1392_s3 = scalar_lea.vmem %s1391_s4, 1024 }
  0x73   : > { %v368_v35 = vand.u32 4294901760, %v367_v29  ;;  %1130 = vmatprep.subr.mxu1 %v437_v31  ;;  %v378_v37 = vand.u32 4294901760, %v377_v32  ;;  %p1393_p0 = scmp.lt.s32.totalorder %s1822_s19, %s1391_s4  ;;  %p1394_p4 = scmp.lt.s32.totalorder %s1392_s3, %s1386_s20 }
  0x74   : > { %1131 = vmatpush3.msra.mxu1 %v437_v31  ;;  %v388_v38 = vand.u32 4294901760, %v387_v34  ;;  %v398_v39 = vand.u32 4294901760, %v397_v36 }
  0x75   : > { %1124 = vmatprep.mubr.f32.mxu0 %v368_v35  ;;  %1132 = vmatprep.subr.mxu1 %v444_v33  ;;  %p1395_p1 = por %p1394_p4, %p1393_p0 }
  0x76   : > { %1125 = vmatmul.mubr.f32.vlgmr.msra.gmra.mxu0 %v378_v37  ;;  %1133 = vmatpush3.msra.mxu1 %v444_v33 }
  0x77   : > { %1141 = vmatpush3.msra.mxu0 %v434_v13  ;;  %1135 = vmatmul.mubr.f32.vlgmr.msra.gmra.mxu1 %v1780_v14  ;;  %p1396_p11 = pnand %p1395_p1, %p1389_p13 }
  0x78   : > { %1150 = vmatprep.subr.mxu1 %v1772_v3  ;;  %1127 = vmatprep.mubr.f32.mxu0 %v388_v38 }
  0x79   : > { %1151 = vmatpush3.msra.mxu1 %v1772_v3  ;;  %1142 = vmatprep.subr.mxu0 %v441_v15 }
  0x7a   : > { %1128 = vmatmul.mubr.f32.gmra.mxu0 %v398_v39  ;;  %1137 = vmatprep.mubr.f32.mxu1 %v1783_v16 }
  0x7b   : > { %1143 = vmatpush3.msra.mxu0 %v441_v15  ;;  %1138 = vmatmul.mubr.f32.gmra.mxu1 %v1788_v18 }
  0x7c   : > { %1152 = vmatprep.subr.mxu1 %v1774_v4  ;;  %1144 = vmatprep.mubr.f32.mxu0 %v365_v17 }
  0x7d   : > { %1153 = vmatpush3.msra.mxu1 %v1774_v4  ;;  %1160 = vmatprep.subr.mxu0 %v435_v19 }
  0x7e   : > { %1145 = vmatmul.mubr.f32.vlgmr.msra.gmra.mxu0 %v375_v20  ;;  %1154 = vmatprep.mubr.f32.mxu1 %v366_v23 }
  0x7f   : > { %1161 = vmatpush3.msra.mxu0 %v435_v19  ;;  %1155 = vmatmul.mubr.f32.vlgmr.msra.gmra.mxu1 %v376_v26 }
  0x80   : > { %1170 = vmatprep.subr.mxu1 %v1772_v3  ;;  %1147 = vmatprep.mubr.f32.mxu0 %v385_v22 }
  0x81   : > { %1171 = vmatpush3.msra.mxu1 %v1772_v3  ;;  %1162 = vmatprep.subr.mxu0 %v442_v21 }
  0x82   : > { %1148 = vmatmul.mubr.f32.gmra.mxu0 %v395_v24  ;;  %1157 = vmatprep.mubr.f32.mxu1 %v386_v28 }
  0x83   : > { %1163 = vmatpush3.msra.mxu0 %v442_v21  ;;  %1158 = vmatmul.mubr.f32.gmra.mxu1 %v396_v30 }
  0x84   : > { %1172 = vmatprep.subr.mxu1 %v1774_v4  ;;  %1164 = vmatprep.mubr.f32.mxu0 %v1776_v9 }
  0x85   : > { %1173 = vmatpush3.msra.mxu1 %v1774_v4  ;;  %1174 = vmatprep.mubr.f32.mxu1 %v1776_v9 }
  0x86   : > { %1165 = vmatmul.mubr.f32.vlgmr.msra.gmra.mxu0 %v1780_v14 }
  0x87   : > { %1167 = vmatprep.mubr.f32.mxu0 %v1783_v16  ;;  %1175 = vmatmul.mubr.f32.vlgmr.msra.gmra.mxu1 %v1780_v14 }
  0x88   : > { %1177 = vmatprep.mubr.f32.mxu1 %v1783_v16 }
  0x8a   : > { %1168 = vmatmul.mubr.f32.gmra.mxu0 %v1788_v18 }
  0x8b   : > { %1178 = vmatmul.mubr.f32.gmra.mxu1 %v1788_v18  ;;  %v1073_v18 = vld [vmem:[%s245_s5 + $0x1] ss:$0 sm:$0xff] }
 0x136   : > { %v1126_v40 = vpop.f32.mrf.mxu0 }
 0x137   : > { %v1136_v42 = vpop.f32.mrf.mxu1 }
 0x138   : > { %v370_v41 = vpop.f32.mrf.mxu0  ;;  %v488_v49 = vadd.f32 %v1136_v42, %v1126_v40 }
 0x139   : > { %v481_v44 = vpop.f32.mrf.mxu1 }
 0x13a   : > { %v1129_v43 = vpop.f32.mrf.mxu0  ;;  %v482_v52 = vadd.f32 %v481_v44, %v370_v41 }
 0x13b   : > { %v1139_v46 = vpop.f32.mrf.mxu1 }
 0x13c   : > { %v390_v45 = vpop.f32.mrf.mxu0  ;;  %v500_v56 = vadd.f32 %v1139_v46, %v1129_v43 }
 0x13d   : > { %v493_v47 = vpop.f32.mrf.mxu1 }
 0x13e   : > { %v1146_v48 = vpop.f32.mrf.mxu0  ;;  %v494_v60 = vadd.f32 %v493_v47, %v390_v45 }
 0x13f   : > { %v1156_v51 = vpop.f32.mrf.mxu1  ;;  %v583_v53 = vadd.f32 %v1146_v48, %v488_v49 }
 0x140   : > { %v575_v50 = vpop.f32.mrf.mxu0 }
 0x141   : > { %v671_v55 = vpop.f32.mrf.mxu1  ;;  %v576_v57 = vadd.f32 %v575_v50, %v482_v52  ;;  %v680_v61 = vadd.f32 %v1156_v51, %v583_v53 }
 0x142   : > { %v1149_v54 = vpop.f32.mrf.mxu0 }
 0x143   : > { %v1159_v59 = vpop.f32.mrf.mxu1  ;;  %v597_v62 = vadd.f32 %v1149_v54, %v500_v56  ;;  %v672_v1 = vadd.f32 %v671_v55, %v576_v57 }
 0x144   : > { %v589_v58 = vpop.f32.mrf.mxu0 }
 0x145   : > { %v687_v63 = vpop.f32.mrf.mxu1  ;;  %v590_v2 = vadd.f32 %v589_v58, %v494_v60  ;;  %v696_v7 = vadd.f32 %v1159_v59, %v597_v62 }
 0x146   : > { %v1166_v0 = vpop.f32.mrf.mxu0 }
 0x147   : > { %v779_v3 = vadd.f32 %v1166_v0, %v680_v61  ;;  %v1176_v5 = vpop.f32.mrf.mxu1  ;;  %v688_v12 = vadd.f32 %v687_v63, %v590_v2 }
 0x148   : > { %v772_v4 = vpop.f32.mrf.mxu0 }
 0x149   : > { %v773_v8 = vadd.f32 %v772_v4, %v672_v1  ;;  %v870_v9 = vadd.f32 %v1176_v5, %v779_v3  ;;  %v863_v11 = vpop.f32.mrf.mxu1 }
 0x14a   : > { %v1169_v10 = vpop.f32.mrf.mxu0 }
 0x14b   : > { %v900_v13 = vmul.f32 %v1072_v6, %v870_v9  ;;  %v791_v14 = vadd.f32 %v1169_v10, %v696_v7  ;;  %v864_v15 = vadd.f32 %v863_v11, %v773_v8  ;;  %v1179_v17 = vpop.f32.mrf.mxu1 }
 0x14c   : > { %v784_v16 = vpop.f32.mrf.mxu0 }
 0x14d   : > { %905 = vst.msk [vmem:[%s272_s28 + $0x8] sm:$0xff] %vm903_vm1, %v900_v13  ;;  %v899_v19 = vmul.f32 %v1072_v6, %v864_v15  ;;  %v785_v20 = vadd.f32 %v784_v16, %v688_v12  ;;  %v882_v21 = vadd.f32 %v1179_v17, %v791_v14  ;;  %v875_v22 = vpop.f32.mrf.mxu1 }
 0x14f   : > { %904 = vst.msk [vmem:[%s272_s28] sm:$0xff] %vm903_vm1, %v899_v19  ;;  %v902_v23 = vmul.f32 %v1073_v18, %v882_v21  ;;  %v876_v24 = vadd.f32 %v875_v22, %v785_v20 }
 0x151   : > { %907 = vst.msk [vmem:[%s272_s28 + $0x18] sm:$0xff] %vm903_vm1, %v902_v23  ;;  %v901_v25 = vmul.f32 %v1073_v18, %v876_v24 }
 0x153   : > { %906 = vst.msk [vmem:[%s272_s28 + $0x10] sm:$0xff] %vm903_vm1, %v901_v25 }
 0x154   : > { %1399 = shalt.err (!%p1396_p11)
}
 0x155   : > { %s1400_s11 = scalar_lea.hbm %s1828_s0, 512  ;;  %s1404_s9 = scalar_lea.hbm %s1936_s23, 2048 }
 0x156   : > { %p1401_p5 = scmp.ne.s32.totalorder %s1828_s0, %s1400_s11  ;;  %p1405_p3 = scmp.lt.s32.totalorder %s1828_s0, %s1936_s23 }
 0x157   : > { %p1406_p2 = scmp.lt.s32.totalorder %s1404_s9, %s1400_s11 }
 0x158   : > { %p1402_p12 = pnand %p1401_p5, %p1937_p9 }
 0x159   : > { %p1407_p10 = por %p1406_p2, %p1405_p3 }
 0x15a   : > { %p1403_p7 = pneg %p1402_p12 }
 0x15c   : > { %p1408_p6 = pnand %p1407_p10, %p1403_p7 }
 0x15e   : > { %1411 = shalt.err (!%p1408_p6)
}
 0x15f   : > { %s1524_s24 = smov 128   ;;  %s1525_s6 = smov 8  }
 0x160   : > { %1188 = dma.vmem_to_hbm [thread:$0]  (%p1937_p9), %s1822_s19, 512, %s1828_s0, %s1834_s17, %s1524_s24, %s1524_s24, %s1525_s6  }
 0x161 PF: > { %p1208_p8 = scmp.ge.s32.totalorder %s1514_s22, 2  ;;  %s942_s26 = sand.u32 1, %s1486_s15  }
 0x162   : > { %p1938_p13 = scmp.ne.s32.totalorder %s1923_s8, 0  ;;  %s943_s28 = scalar_lea.sflag [#allocation4], %s942_s26 }
 0x164   : > { %p1202_p0 = pnand %p1208_p8, %p1938_p13 }
 0x166   : > { %p1203_p4 = pneg %p1202_p0 }
 0x168   : > { %1469 = dma.done.wait (%p1203_p4), %s943_s28, 512  }
 0x169   : > { %1471 = vsyncadd (%p1203_p4), %s943_s28, 4294966784  ;;  %s20_s22 = sadd.s32 1, %s1514_s22   ;;  %s1939_s25 = sld [smem:[#allocation19_spill]] }
 0x16a   : > { %p17_p1 = scmp.ge.s32.totalorder %s20_s22, 6   ;;  %s1940_s19 = sld [smem:[#allocation13_spill]] }
 0x16b   : > { %s1941_s17 = sld [smem:[#allocation18_spill]]  ;;  %s1945_s12 = smov %s1478_s13 }
 0x16c   : > { %s1942_s18 = sld [smem:[#allocation15_spill]]  ;;  %s1946_s13 = smov %s1482_s14 }
 0x16d   : > { %s1943_s20 = sld [smem:[#allocation16_spill]]  ;;  %s1948_s15 = smov %s1490_s16 }
 0x16e   : > { %s1944_s29 = sld [smem:[#allocation17_spill]] }
 0x16f   : > { %s1947_s14 = smov %s1939_s25 }
 0x170   : > { %s1949_s16 = smov %s1940_s19  ;;  %s1950_s19 = smov %s1510_s21 }
 0x171   :  { %19 = sbr.rel (!%p17_p1) target bundleno = 13 (0xd), region = 92 }
 0x174   : > { %s1951_s21 = smov %s1944_s29 }
 0x176   :  { %948 = vsyncpa [#allocation3], 1 }
 0x177   :  { %950 = vsyncpa [#allocation3 + $0x1], 1 }
 0x178   :  { %951 = vsyncpa [#allocation6], 1 }
 0x179   :  { %952 = vsyncpa [#allocation4], 1 }
 0x17a   :  { %954 = vsyncpa [#allocation4 + $0x1], 1 }

</bundles_post_ra>
